<compile_context>
chip_gen: v5e
topology: v5e:2x2
jax: 0.10.0
libtpu: 0.0.40
codegen_flags: <defaults>
</compile_context>

<pallas_src>
import functools
import math

import jax
import jax.numpy as jnp
from jax import lax
from jax.experimental import pallas as pl
from jax.experimental.pallas import tpu as pltpu

LN_EPS = 1e-5
_INV_SQRT2 = 1.0 / math.sqrt(2.0)
_MIB = 1024 * 1024


def _round_up(x, m):
    return ((x + m - 1) // m) * m


def _erf(x):
    # Abramowitz & Stegun 7.1.26: |abs err| < 1.5e-7 (f32-exact GELU quality).
    a1, a2, a3, a4, a5 = (0.254829592, -0.284496736, 1.421413741,
                          -1.453152027, 1.061405429)
    p = 0.3275911
    z = jnp.abs(x)
    t = 1.0 / (1.0 + p * z)
    poly = ((((a5 * t + a4) * t + a3) * t + a2) * t + a1) * t
    y = 1.0 - poly * jnp.exp(-z * z)
    return jnp.where(x >= 0, y, -y)


def _lm_head_kernel(x_ref, w1_ref, pb_ref, w2_ref, b2_ref, o_ref, hn_ref, *,
                    chunk):
    # x_ref: (tm, H)        w1_ref: (H, H)      pb_ref: (3, H) = [b1; gamma; beta]
    # w2_ref: (H, tn)       b2_ref: (1, tn)     o_ref: (tm, tn)
    # hn_ref: (tm, H) VMEM scratch, persists across the vocab (inner) axis.
    j = pl.program_id(1)

    @pl.when(j == 0)
    def _():
        b1 = pb_ref[0:1, :].astype(jnp.float32)
        gamma = pb_ref[1:2, :].astype(jnp.float32)
        beta = pb_ref[2:3, :].astype(jnp.float32)

        def dense_gelu_ln(xs):
            # dense: x @ W1 + b1 (MXU, f32 accumulation)
            h = jnp.dot(xs, w1_ref[...], preferred_element_type=jnp.float32)
            h = h + b1
            # exact GELU (PyTorch F.gelu default): 0.5*x*(1+erf(x/sqrt(2)))
            h = 0.5 * h * (1.0 + _erf(h * _INV_SQRT2))
            # LayerNorm over hidden (biased variance, eps=1e-5), stats in f32.
            mu = jnp.mean(h, axis=-1, keepdims=True)
            d = h - mu
            var = jnp.mean(d * d, axis=-1, keepdims=True)
            return d * lax.rsqrt(var + LN_EPS) * gamma + beta

        rows = hn_ref.shape[0]
        nchunks = rows // chunk
        if nchunks <= 1:
            hn_ref[...] = dense_gelu_ln(x_ref[...]).astype(hn_ref.dtype)
        else:
            # Chunk the epilogue over row sub-blocks to bound f32 temporaries.
            def body(c, carry):
                r0 = pl.multiple_of(c * chunk, chunk)
                hn_ref[pl.ds(r0, chunk), :] = dense_gelu_ln(
                    x_ref[pl.ds(r0, chunk), :]).astype(hn_ref.dtype)
                return carry

            lax.fori_loop(0, nchunks, body, 0)

    # decoder tile: hn @ W2[:, j*tn:(j+1)*tn] + b2 tile (MXU, f32 accumulation)
    out = jnp.dot(hn_ref[...], w2_ref[...], preferred_element_type=jnp.float32)
    out = out + b2_ref[...].astype(jnp.float32)
    o_ref[...] = out.astype(o_ref.dtype)


def _vmem_limit_bytes():
    cap = 64 * _MIB  # conservative default (v7x per-core VMEM)
    try:
        cap = int(pltpu.get_tpu_info().vmem_capacity_bytes)
    except Exception:
        pass
    return int(max(32 * _MIB, min(cap - 12 * _MIB, 110 * _MIB)))


def _epilogue_chunk(tm):
    if tm <= 256:
        return tm
    for c in (256, 128, 64, 32, 16, 8):
        if tm % c == 0:
            return c
    return tm


def _choose_tiles(H, x_b, w1_b, w2_b, out_b, vmem_limit):
    """Largest token tile (primary lever), then largest vocab tile, that fits."""
    budget = int(vmem_limit * 0.70)  # headroom for Mosaic-internal scratch
    tm_cands = (1024, 768, 512, 384, 256, 192, 128, 64, 32, 16)
    tn_cands = (2048, 1536, 1024, 768, 512, 384, 256, 128)
    for tm in tm_cands:
        chunk = _epilogue_chunk(tm)
        for tn in tn_cands:
            need = (2 * tm * H * x_b        # x tile (double buffered)
                    + 2 * H * H * w1_b      # dense weight (grid-invariant)
                    + 2 * H * tn * w2_b     # decoder weight tile
                    + 2 * tm * tn * out_b   # output tile
                    + tm * H * 4            # hn VMEM scratch
                    + 3 * chunk * H * 4     # dense/GELU/LN f32 temporaries
                    + tm * tn * 4)          # decoder f32 accumulator temp
            if need <= budget:
                return tm, tn
    return 16, 128


def roberta_lm_head(x, params, *, tm=None, tn=None, out_dtype=None):
    """x: [..., hidden] -> logits [..., vocab].

    params = (w1t, b1, gamma, beta, w2t, b2) with linear weights stored
    pre-transposed to [in, out].  out_dtype=jnp.bfloat16 gives bf16 logits
    (halves writeback) when the consumer tolerates it.
    """
    w1t, b1, gamma, beta, w2t, b2 = params
    H = w1t.shape[0]
    V = w2t.shape[1]
    lead = x.shape[:-1]
    xm = x.reshape(-1, H)
    M = xm.shape[0]
    out_dtype = x.dtype if out_dtype is None else out_dtype

    vmem_limit = _vmem_limit_bytes()
    tm_auto, tn_auto = _choose_tiles(
        H, xm.dtype.itemsize, w1t.dtype.itemsize, w2t.dtype.itemsize,
        jnp.dtype(out_dtype).itemsize, vmem_limit)

    sub = 16 if xm.dtype == jnp.bfloat16 else 8
    tm = tm_auto if tm is None else tm
    tn = tn_auto if tn is None else tn
    tm = _round_up(max(int(tm), sub), sub)
    tn = _round_up(max(int(tn), 128), 128)
    # block == full dim when the problem is smaller than the tile; otherwise a
    # ragged last block (no host-side padding, boundary handled by Pallas).
    tm_eff = M if M <= tm else tm
    tn_eff = V if V <= tn else tn
    chunk = _epilogue_chunk(tm_eff)

    grid = (pl.cdiv(M, tm_eff), pl.cdiv(V, tn_eff))

    # b1 / gamma / beta packed into one small f32 block (single DMA).
    pb = jnp.stack([b1, gamma, beta]).astype(jnp.float32)
    b2_2d = b2.reshape(1, V)

    # The decoder matmul runs in the decoder-weight dtype (native bf16 MXU when
    # the weights are bf16 -- recommended on v5e); f32 otherwise.
    hn_dtype = jnp.bfloat16 if w2t.dtype == jnp.bfloat16 else jnp.float32

    kernel = functools.partial(_lm_head_kernel, chunk=chunk)

    out = pl.pallas_call(
        kernel,
        out_shape=jax.ShapeDtypeStruct((M, V), out_dtype),
        grid_spec=pltpu.PrefetchScalarGridSpec(
            num_scalar_prefetch=0,
            grid=grid,
            in_specs=[
                pl.BlockSpec((tm_eff, H), lambda i, j: (i, 0)),   # x tile
                pl.BlockSpec((H, H), lambda i, j: (0, 0)),        # dense weight
                pl.BlockSpec((3, H), lambda i, j: (0, 0)),        # b1/gamma/beta
                pl.BlockSpec((H, tn_eff), lambda i, j: (0, j)),   # decoder W tile
                pl.BlockSpec((1, tn_eff), lambda i, j: (0, j)),   # decoder b tile
            ],
            out_specs=pl.BlockSpec((tm_eff, tn_eff), lambda i, j: (i, j)),
            scratch_shapes=[pltpu.VMEM((tm_eff, H), hn_dtype)],
        ),
        compiler_params=pltpu.CompilerParams(
            dimension_semantics=("parallel", "arbitrary"),
            vmem_limit_bytes=vmem_limit),
    )(xm, w1t, pb, w2t, b2_2d)

    return out.reshape(*lead, V)


def init_params(key, vocab_size, hidden_size, dtype=jnp.float32):
    k1, k2, k3, k4 = jax.random.split(key, 4)
    # Linear weights are stored already transposed to [in, out].
    w1t = jax.random.normal(k1, (hidden_size, hidden_size), dtype) * 0.02
    b1 = jax.random.normal(k2, (hidden_size,), dtype) * 0.02
    gamma = jnp.ones((hidden_size,), dtype)
    beta = jnp.zeros((hidden_size,), dtype)
    w2t = jax.random.normal(k3, (hidden_size, vocab_size), dtype) * 0.02
    b2 = jax.random.normal(k4, (vocab_size,), dtype) * 0.02
    return (w1t, b1, gamma, beta, w2t, b2)


def _reference(x, params):
    w1t, b1, gamma, beta, w2t, b2 = params
    xf = x.astype(jnp.float32)
    h = xf @ w1t.astype(jnp.float32) + b1.astype(jnp.float32)
    h = 0.5 * h * (1.0 + lax.erf(h * _INV_SQRT2))
    mu = jnp.mean(h, axis=-1, keepdims=True)
    var = jnp.mean((h - mu) ** 2, axis=-1, keepdims=True)
    hn = (h - mu) * lax.rsqrt(var + LN_EPS)
    hn = hn * gamma.astype(jnp.float32) + beta.astype(jnp.float32)
    return hn @ w2t.astype(jnp.float32) + b2.astype(jnp.float32)


if __name__ == "__main__":
    key = jax.random.PRNGKey(0)
    kx, kp = jax.random.split(key)

    # Test 1: small shapes consistent with the module (single-tile path).
    batch, seq, hidden, vocab = 2, 8, 32, 64
    x = jax.random.normal(kx, (batch, seq, hidden), jnp.float32)
    params = init_params(kp, vocab, hidden)
    out = jax.block_until_ready(roberta_lm_head(x, params))
    ref = _reference(x, params)
    assert out.shape == (batch, seq, vocab)
    assert jnp.allclose(out, ref, atol=1e-4, rtol=1e-4), "mismatch (test 1)"

    # Test 2: multi-tile grid with ragged boundary blocks on both axes
    # (M=44 tokens with tm=16, V=400 with tn=128).
    b2_, s2, h2, v2 = 2, 22, 128, 400
    x2 = jax.random.normal(kx, (b2_, s2, h2), jnp.float32)
    p2 = init_params(kp, v2, h2)
    out2 = jax.block_until_ready(roberta_lm_head(x2, p2, tm=16, tn=128))
    ref2 = _reference(x2, p2)
    assert out2.shape == (b2_, s2, v2)
    assert jnp.allclose(out2, ref2, atol=1e-3, rtol=1e-3), "mismatch (test 2)"

    # Test 3: big token tile -> chunked dense/GELU/LN epilogue (tm=512, chunk=256).
    b3, s3, h3, v3 = 4, 128, 128, 256
    x3 = jax.random.normal(kx, (b3, s3, h3), jnp.float32)
    p3 = init_params(kp, v3, h3)
    out3 = jax.block_until_ready(roberta_lm_head(x3, p3))
    ref3 = _reference(x3, p3)
    assert out3.shape == (b3, s3, v3)
    assert jnp.allclose(out3, ref3, atol=1e-3, rtol=1e-3), "mismatch (test 3)"

    # Test 4: bf16 weights/activations (bf16 hn + native bf16 MXU path).
    b4, s4, h4, v4 = 2, 16, 64, 128
    x4 = jax.random.normal(kx, (b4, s4, h4), jnp.float32).astype(jnp.bfloat16)
    p4 = tuple(p.astype(jnp.bfloat16) for p in init_params(kp, v4, h4))
    out4 = jax.block_until_ready(roberta_lm_head(x4, p4))
    ref4 = _reference(x4, p4)
    assert out4.shape == (b4, s4, v4)
    assert jnp.allclose(out4.astype(jnp.float32), ref4, atol=5e-2, rtol=5e-2), \
        "mismatch (test 4)"

    print("KERNEL_OK")
</pallas_src>

<mosaic_0001>
module attributes {stable_mosaic.version = 11 : i64} {
  func.func @_lm_head_kernel(%arg0: i32, %arg1: i32, %arg2: memref<16x32xf32, #tpu.memory_space<vmem>>, %arg3: memref<32x32xf32, #tpu.memory_space<vmem>>, %arg4: memref<3x32xf32, #tpu.memory_space<vmem>>, %arg5: memref<32x64xf32, #tpu.memory_space<vmem>>, %arg6: memref<1x64xf32, #tpu.memory_space<vmem>>, %arg7: memref<16x64xf32, #tpu.memory_space<vmem>>, %arg8: memref<16x32xf32, #tpu.memory_space<vmem>>) attributes {dimension_semantics = [#tpu.dimension_semantics<parallel>, #tpu.dimension_semantics<arbitrary>], iteration_bounds = array<i64: 1, 1>, scalar_prefetch = 0 : i64, scratch_operands = 1 : i64, tpu.core_type = #tpu.core_type<tc>, window_params = [{transform_indices = @transform_0, window_bounds = array<i64: 16, 32>}, {pipeline_mode = #tpu.pipeline_mode<synchronous>, transform_indices = @transform_1, window_bounds = array<i64: 32, 32>}, {pipeline_mode = #tpu.pipeline_mode<synchronous>, transform_indices = @transform_2, window_bounds = array<i64: 3, 32>}, {transform_indices = @transform_3, window_bounds = array<i64: 32, 64>}, {transform_indices = @transform_4, window_bounds = array<i64: 1, 64>}, {transform_indices = @transform_5, window_bounds = array<i64: 16, 64>}]} {
    %c0_i32 = arith.constant 0 : i32
    %0 = arith.cmpi eq, %arg1, %c0_i32 : i32
    %1 = arith.extui %0 : i1 to i32
    %c0_i32_0 = arith.constant 0 : i32
    %2 = arith.cmpi ne, %1, %c0_i32_0 : i32
    scf.if %2 {
      %c0_8 = arith.constant 0 : index
      %c0_9 = arith.constant 0 : index
      %10 = vector.load %arg4[%c0_8, %c0_9] : memref<3x32xf32, #tpu.memory_space<vmem>>, vector<1x32xf32>
      %c1 = arith.constant 1 : index
      %c0_10 = arith.constant 0 : index
      %11 = vector.load %arg4[%c1, %c0_10] : memref<3x32xf32, #tpu.memory_space<vmem>>, vector<1x32xf32>
      %c2 = arith.constant 2 : index
      %c0_11 = arith.constant 0 : index
      %12 = vector.load %arg4[%c2, %c0_11] : memref<3x32xf32, #tpu.memory_space<vmem>>, vector<1x32xf32>
      %c0_12 = arith.constant 0 : index
      %c0_13 = arith.constant 0 : index
      %13 = vector.load %arg2[%c0_12, %c0_13] : memref<16x32xf32, #tpu.memory_space<vmem>>, vector<16x32xf32>
      %c0_14 = arith.constant 0 : index
      %c0_15 = arith.constant 0 : index
      %14 = vector.load %arg3[%c0_14, %c0_15] : memref<32x32xf32, #tpu.memory_space<vmem>>, vector<32x32xf32>
      %cst_16 = arith.constant dense<0.000000e+00> : vector<16x32xf32>
      %15 = tpu.matmul %13, %14, %cst_16 {dimension_numbers = #tpu.dot_dimension_numbers<[1], [0], [0], [1], [0, 0, 1, 1], [], []>} : vector<16x32xf32>, vector<32x32xf32>, vector<16x32xf32> -> vector<16x32xf32>
      %16 = vector.broadcast %10 : vector<1x32xf32> to vector<16x32xf32>
      %17 = arith.addf %15, %16 : vector<16x32xf32>
      %cst_17 = arith.constant 5.000000e-01 : f32
      %18 = vector.broadcast %cst_17 : f32 to vector<16x32xf32>
      %19 = arith.mulf %18, %17 : vector<16x32xf32>
      %cst_18 = arith.constant 0.707106769 : f32
      %20 = vector.broadcast %cst_18 : f32 to vector<16x32xf32>
      %21 = arith.mulf %17, %20 : vector<16x32xf32>
      %22 = math.absf %21 : vector<16x32xf32>
      %cst_19 = arith.constant 0.327591091 : f32
      %23 = vector.broadcast %cst_19 : f32 to vector<16x32xf32>
      %24 = arith.mulf %23, %22 : vector<16x32xf32>
      %cst_20 = arith.constant 1.000000e+00 : f32
      %25 = vector.broadcast %cst_20 : f32 to vector<16x32xf32>
      %26 = arith.addf %25, %24 : vector<16x32xf32>
      %cst_21 = arith.constant 1.000000e+00 : f32
      %27 = vector.broadcast %cst_21 : f32 to vector<16x32xf32>
      %28 = arith.divf %27, %26 : vector<16x32xf32>
      %cst_22 = arith.constant 1.06140542 : f32
      %29 = vector.broadcast %cst_22 : f32 to vector<16x32xf32>
      %30 = arith.mulf %29, %28 : vector<16x32xf32>
      %cst_23 = arith.constant -1.45315206 : f32
      %31 = vector.broadcast %cst_23 : f32 to vector<16x32xf32>
      %32 = arith.addf %30, %31 : vector<16x32xf32>
      %33 = arith.mulf %32, %28 : vector<16x32xf32>
      %cst_24 = arith.constant 1.42141378 : f32
      %34 = vector.broadcast %cst_24 : f32 to vector<16x32xf32>
      %35 = arith.addf %33, %34 : vector<16x32xf32>
      %36 = arith.mulf %35, %28 : vector<16x32xf32>
      %cst_25 = arith.constant -0.284496725 : f32
      %37 = vector.broadcast %cst_25 : f32 to vector<16x32xf32>
      %38 = arith.addf %36, %37 : vector<16x32xf32>
      %39 = arith.mulf %38, %28 : vector<16x32xf32>
      %cst_26 = arith.constant 0.254829586 : f32
      %40 = vector.broadcast %cst_26 : f32 to vector<16x32xf32>
      %41 = arith.addf %39, %40 : vector<16x32xf32>
      %42 = arith.mulf %41, %28 : vector<16x32xf32>
      %cst_27 = arith.constant 0.000000e+00 : f32
      %43 = vector.broadcast %cst_27 : f32 to vector<16x32xf32>
      %44 = arith.subf %43, %22 : vector<16x32xf32>
      %45 = arith.mulf %44, %22 : vector<16x32xf32>
      %46 = math.exp %45 : vector<16x32xf32>
      %47 = arith.mulf %42, %46 : vector<16x32xf32>
      %cst_28 = arith.constant 1.000000e+00 : f32
      %48 = vector.broadcast %cst_28 : f32 to vector<16x32xf32>
      %49 = arith.subf %48, %47 : vector<16x32xf32>
      %cst_29 = arith.constant 0.000000e+00 : f32
      %50 = vector.broadcast %cst_29 : f32 to vector<16x32xf32>
      %51 = arith.cmpf oge, %21, %50 : vector<16x32xf32>
      %cst_30 = arith.constant 0.000000e+00 : f32
      %52 = vector.broadcast %cst_30 : f32 to vector<16x32xf32>
      %53 = arith.subf %52, %49 : vector<16x32xf32>
      %54 = arith.select %51, %49, %53 : vector<16x32xi1>, vector<16x32xf32>
      %cst_31 = arith.constant 1.000000e+00 : f32
      %55 = vector.broadcast %cst_31 : f32 to vector<16x32xf32>
      %56 = arith.addf %55, %54 : vector<16x32xf32>
      %57 = arith.mulf %19, %56 : vector<16x32xf32>
      %cst_32 = arith.constant dense<0.000000e+00> : vector<16xf32>
      %58 = vector.multi_reduction <add>, %57, %cst_32 [1] : vector<16x32xf32> to vector<16xf32>
      %59 = vector.shape_cast %58 : vector<16xf32> to vector<16x1xf32>
      %cst_33 = arith.constant 3.200000e+01 : f32
      %60 = vector.broadcast %cst_33 : f32 to vector<16x1xf32>
      %61 = arith.divf %59, %60 : vector<16x1xf32>
      %62 = vector.broadcast %61 : vector<16x1xf32> to vector<16x32xf32>
      %63 = arith.subf %57, %62 : vector<16x32xf32>
      %64 = arith.mulf %63, %63 : vector<16x32xf32>
      %cst_34 = arith.constant dense<0.000000e+00> : vector<16xf32>
      %65 = vector.multi_reduction <add>, %64, %cst_34 [1] : vector<16x32xf32> to vector<16xf32>
      %66 = vector.shape_cast %65 : vector<16xf32> to vector<16x1xf32>
      %cst_35 = arith.constant 3.200000e+01 : f32
      %67 = vector.broadcast %cst_35 : f32 to vector<16x1xf32>
      %68 = arith.divf %66, %67 : vector<16x1xf32>
      %cst_36 = arith.constant 9.99999974E-6 : f32
      %69 = vector.broadcast %cst_36 : f32 to vector<16x1xf32>
      %70 = arith.addf %68, %69 : vector<16x1xf32>
      %71 = math.rsqrt %70 : vector<16x1xf32>
      %72 = vector.broadcast %71 : vector<16x1xf32> to vector<16x32xf32>
      %73 = arith.mulf %63, %72 : vector<16x32xf32>
      %74 = vector.broadcast %11 : vector<1x32xf32> to vector<16x32xf32>
      %75 = arith.mulf %73, %74 : vector<16x32xf32>
      %76 = vector.broadcast %12 : vector<1x32xf32> to vector<16x32xf32>
      %77 = arith.addf %75, %76 : vector<16x32xf32>
      %c0_37 = arith.constant 0 : index
      %c0_38 = arith.constant 0 : index
      %78 = vector.load %arg8[%c0_37, %c0_38] : memref<16x32xf32, #tpu.memory_space<vmem>>, vector<16x32xf32>
      tpu.vector_store %arg8[%c0_37, %c0_38], %77 {strides = array<i32>} : memref<16x32xf32, #tpu.memory_space<vmem>>, vector<16x32xf32>,
    } else {
    }
    %c0 = arith.constant 0 : index
    %c0_1 = arith.constant 0 : index
    %3 = vector.load %arg8[%c0, %c0_1] : memref<16x32xf32, #tpu.memory_space<vmem>>, vector<16x32xf32>
    %c0_2 = arith.constant 0 : index
    %c0_3 = arith.constant 0 : index
    %4 = vector.load %arg5[%c0_2, %c0_3] : memref<32x64xf32, #tpu.memory_space<vmem>>, vector<32x64xf32>
    %cst = arith.constant dense<0.000000e+00> : vector<16x64xf32>
    %5 = tpu.matmul %3, %4, %cst {dimension_numbers = #tpu.dot_dimension_numbers<[1], [0], [0], [1], [0, 0, 1, 1], [], []>} : vector<16x32xf32>, vector<32x64xf32>, vector<16x64xf32> -> vector<16x64xf32>
    %c0_4 = arith.constant 0 : index
    %c0_5 = arith.constant 0 : index
    %6 = vector.load %arg6[%c0_4, %c0_5] : memref<1x64xf32, #tpu.memory_space<vmem>>, vector<1x64xf32>
    %7 = vector.broadcast %6 : vector<1x64xf32> to vector<16x64xf32>
    %8 = arith.addf %5, %7 : vector<16x64xf32>
    %c0_6 = arith.constant 0 : index
    %c0_7 = arith.constant 0 : index
    %9 = vector.load %arg7[%c0_6, %c0_7] : memref<16x64xf32, #tpu.memory_space<vmem>>, vector<16x64xf32>
    tpu.vector_store %arg7[%c0_6, %c0_7], %8 {strides = array<i32>} : memref<16x64xf32, #tpu.memory_space<vmem>>, vector<16x64xf32>,
    return
  }
  func.func @transform_0(%arg0: i32, %arg1: i32) -> (i32, i32) {
    %c0_i32 = arith.constant 0 : i32
    %c0_i32_0 = arith.constant 0 : i32
    return %arg0, %c0_i32 : i32, i32
  }
  func.func @transform_1(%arg0: i32, %arg1: i32) -> (i32, i32) {
    %c0_i32 = arith.constant 0 : i32
    %c0_i32_0 = arith.constant 0 : i32
    %c0_i32_1 = arith.constant 0 : i32
    return %c0_i32, %c0_i32_0 : i32, i32
  }
  func.func @transform_2(%arg0: i32, %arg1: i32) -> (i32, i32) {
    %c0_i32 = arith.constant 0 : i32
    %c0_i32_0 = arith.constant 0 : i32
    %c0_i32_1 = arith.constant 0 : i32
    return %c0_i32, %c0_i32_0 : i32, i32
  }
  func.func @transform_3(%arg0: i32, %arg1: i32) -> (i32, i32) {
    %c0_i32 = arith.constant 0 : i32
    %c0_i32_0 = arith.constant 0 : i32
    return %c0_i32, %arg1 : i32, i32
  }
  func.func @transform_4(%arg0: i32, %arg1: i32) -> (i32, i32) {
    %c0_i32 = arith.constant 0 : i32
    %c0_i32_0 = arith.constant 0 : i32
    return %c0_i32, %arg1 : i32, i32
  }
  func.func @transform_5(%arg0: i32, %arg1: i32) -> (i32, i32) {
    %c0_i32 = arith.constant 0 : i32
    return %arg0, %arg1 : i32, i32
  }
}

</mosaic_0001>

<bundles_post_ra>
// kernel: tpu_custom_call.1
= control target key start
LH: loop header
LB: loop body
LE: loop exit
PB: predicated region body
PF: predicated region fallthrough
CT: control target
= control target key end

     0   :  { %10 = vsyncpa [#allocation4], 0  ;;  %s589_s0 = inlined_call_operand.hbm [shape: f32[16,32], index: 0, kind: input, shape index: {}]   ;;  %s590_s1 = inlined_call_operand.hbm [shape: f32[32,32], index: 1, kind: input, shape index: {}]   ;;  %s591_s2 = inlined_call_operand.hbm [shape: f32[3,32], index: 2, kind: input, shape index: {}]   ;;  %s592_s3 = inlined_call_operand.hbm [shape: f32[32,64], index: 3, kind: input, shape index: {}]   ;;  %s593_s4 = inlined_call_operand.vmem [shape: f32[1,64], index: 4, kind: input, shape index: {}]   ;;  %s594_s5 = inlined_call_operand.hbm [shape: f32[16,64], index: 5, kind: output, shape index: {}]  }
   0x1   :  { %11 = vsyncpa [#allocation7], 0 }
   0x2   :  { %12 = vsyncpa [#allocation10], 0 }
   0x3   :  { %13 = vsyncpa [#allocation5], 0  ;;  %s31_s20 = sshll.u32 %s590_s1, 4  ;;  %s495_s21 = smov [#allocation6]   ;;  %s32_s20 = int_to_ptr.hbm [resolvable:$true] %s31_s20 }
   0x4   :  { %s33_s22 = sshll.u32 %s495_s21, 4  ;;  %s18_s25 = sshll.u32 %s589_s0, 4  ;;  %s34_s22 = int_to_ptr.vmem [resolvable:$true] %s33_s22  ;;  %s19_s25 = int_to_ptr.hbm [resolvable:$true] %s18_s25 }
   0x5   :  { %s496_s26 = smov 128   ;;  %s497_s27 = smov 8  }
   0x6   :  { %39 = dma.hbm_to_vmem [thread:$0]  %s32_s20, 512, %s34_s22, [#allocation7], %s496_s26, %s496_s26, %s497_s27  }
   0x7   :  { %s498_s28 = smov [#allocation3]   ;;  %s45_s1 = sshll.u32 %s591_s2, 4  ;;  %s46_s1 = int_to_ptr.hbm [resolvable:$true] %s45_s1 }
   0x8   :  { %s20_s29 = sshll.u32 %s498_s28, 4  ;;  %s55_s8 = sshll.u32 %s592_s3, 4  ;;  %s21_s29 = int_to_ptr.vmem [resolvable:$true] %s20_s29  ;;  %s56_s8 = int_to_ptr.hbm [resolvable:$true] %s55_s8 }
   0x9   :  { %26 = dma.hbm_to_vmem [thread:$0]  %s19_s25, 256, %s21_s29, [#allocation4], %s496_s26, %s496_s26, %s497_s27  }
   0xa   :  { %s499_s9 = smov [#allocation8]   ;;  %s500_s11 = smov [#allocation9]  }
   0xb   :  { %s47_s10 = sshll.u32 %s499_s9, 4  ;;  %s57_s12 = sshll.u32 %s500_s11, 4  ;;  %s48_s10 = int_to_ptr.vmem [resolvable:$true] %s47_s10  ;;  %s58_s12 = int_to_ptr.vmem [resolvable:$true] %s57_s12 }
   0xc   :  { %50 = dma.hbm_to_vmem [thread:$0]  %s46_s1, 64, %s48_s10, [#allocation7]  }
   0xd   :  { %63 = dma.hbm_to_vmem [thread:$0]  %s56_s8, 512, %s58_s12, [#allocation10], %s496_s26, %s496_s26, %s497_s27  }
   0xe   :  { %487 = dma.done.wait [#allocation4], 256  }
   0xf   :  { %488 = vsyncadd [#allocation4], 4294967040 }
  0x10   :  { %489 = dma.done.wait [#allocation7], 576  }
  0x11   :  { %490 = vsyncadd [#allocation7], 4294966720 }
  0x12   :  { %491 = dma.done.wait [#allocation10], 512  }
  0x13   :  { %492 = vsyncadd [#allocation10], 4294966784  ;;  %v94_v0 = vld [vmem:[#allocation6 + $0x18] sm:$0xff]  ;;  %v93_v1 = vld [vmem:[#allocation6 + $0x10] sm:$0xff]  ;;  %vm96_vm0 = vcmask 261120   ;;  %s502_s13 = smov [#allocation11]  }
  0x14   :  { %115 = vmatpush.msra.mxu0 %v94_v0  ;;  %333 = vmatpush.msra.mxu2 %v94_v0  ;;  %v92_v2 = vld [vmem:[#allocation6 + $0x8] sm:$0xff]  ;;  %v91_v3 = vld [vmem:[#allocation6] sm:$0xff]  ;;  %v89_v4 = vld [vmem:[#allocation3] sm:$0xff]  ;;  %s312_s14 = sshll.u32 %s502_s13, 4  ;;  %s314_s17 = sshll.u32 %s594_s5, 4  ;;  %s313_s14 = int_to_ptr.vmem [resolvable:$true] %s312_s14  ;;  %s315_s17 = int_to_ptr.hbm [resolvable:$true] %s314_s17 }
  0x15   :  { %v90_v5 = vld [vmem:[#allocation3 + $0x8] sm:$0xff]  ;;  %v349_v6 = vld [vmem:[#allocation8] ss:$0 sm:$0xff] }
  0x16   :  { %116 = vmatpush.msra.mxu0 %v93_v1  ;;  %334 = vmatpush.msra.mxu2 %v93_v1 }
  0x18   :  { %117 = vmatpush.msra.mxu0 %v92_v2  ;;  %335 = vmatpush.msra.mxu2 %v92_v2 }
  0x1a   :  { %118 = vmatpush.msra.mxu0 %v91_v3  ;;  %336 = vmatpush.msra.mxu2 %v91_v3 }
  0x1b   :  { %329 = vmatmul.msk.f32.vlgmr.msra.gmra.mxu0 %vm96_vm0, %v89_v4  ;;  %330 = vmatmul.msk.f32.vlgmr.msra.gmra.mxu2 %vm96_vm0, %v90_v5 }
  0x98   :  { %v120_v7 = vpop.f32.mrf.mxu0 }
  0x99   :  { %v556_v8 = vadd.f32 %v349_v6, %v120_v7 }
  0x9b   :  { %v559_v9 = vmul.f32 0.70710677, %v556_v8 }
  0x9d   :  { %v130_v10 = vand.u32 2147483647, %v559_v9  ;;  %vm196_vm10 = vcmp.ge.f32.partialorder %v559_v9, 0.0 }
  0x9e   :  { %v123_v11 = vpop.f32.mrf.mxu2 }
  0x9f   :  { %v132_v12 = vmul.f32 0.3275911, %v130_v10  ;;  %v562_v13 = vadd.f32 %v349_v6, %v123_v11  ;;  %v184_v36 = vsub.f32 0.0, %v130_v10 }
  0xa1   :  { %v134_v14 = vadd.f32 1.0, %v132_v12  ;;  %v565_v15 = vmul.f32 0.70710677, %v562_v13  ;;  %v186_v42 = vmul.f32 %v184_v36, %v130_v10  ;;  %v127_v10 = vmul.f32 0.5, %v562_v13  ;;  %v269_v36 = vld [vmem:[#allocation9 + $0x10] sm:$0xff] }
  0xa3   :  { %353 = vrcp.f32 %v134_v14  ;;  %v131_v16 = vand.u32 2147483647, %v565_v15  ;;  %v147_v21 = vand.u32 2147483648, %v134_v14  ;;  %vm141_vm1 = vweird.f32 %v134_v14 }
  0xa4   :  { %v145_v23 = vand.u32 2147483647, %v134_v14  ;;  %v188_v49 = vmul.f32 1.442695, %v186_v42  ;;  %vm197_vm9 = vcmp.ge.f32.partialorder %v565_v15, 0.0 }
  0xa5   :  { %v133_v17 = vmul.f32 0.3275911, %v131_v16  ;;  %v148_v25 = vor.u32 1.1754944e-38, %v147_v21  ;;  %v185_v43 = vsub.f32 0.0, %v131_v16  ;;  %v501_v21 = vmov 32.0  }
  0xa6   :  { %vm146_vm4 = vcmp.eq.f32.partialorder %v145_v23, 8.507059e+37 }
  0xa7   :  { %v135_v18 = vadd.f32 1.0, %v133_v17  ;;  %v187_v50 = vmul.f32 %v185_v43, %v131_v16 }
  0xa9   :  { %v354_v19 = vpop.eup %353  ;;  %355 = vrcp.f32 %v135_v18  ;;  %v162_v32 = vand.u32 2147483648, %v135_v18  ;;  %v160_v35 = vand.u32 2147483647, %v135_v18  ;;  %vm156_vm6 = vweird.f32 %v135_v18 }
  0xaa   :  { %v137_v20 = vmul.f32 %v354_v19, %v134_v14  ;;  %vm142_vm2 = vweird.f32 %v354_v19  ;;  %357 = vpow2.f32 %v188_v49  ;;  %v190_v55 = vmul.f32 1.442695, %v187_v50 }
  0xab   :  { %vm143_vm3 = vmor %vm141_vm1, %vm142_vm2  ;;  %v163_v39 = vor.u32 1.1754944e-38, %v162_v32  ;;  %vm161_vm8 = vcmp.eq.f32.partialorder %v160_v35, 8.507059e+37 }
  0xac   :  { %v138_v22 = vsub.f32 1.0, %v137_v20  ;;  %359 = vpow2.f32 %v190_v55  ;;  %v351_v55 = vld [vmem:[#allocation8 + $0x2] ss:$0 sm:$0xff] }
  0xad   :  { %361 = vrcp.f32 %v501_v21 }
  0xae   :  { %v139_v24 = vmul.f32 %v354_v19, %v138_v22 }
  0xaf   :  { %v356_v26 = vpop.eup %355 }
  0xb0   :  { %v140_v27 = vadd.f32 %v354_v19, %v139_v24  ;;  %v152_v28 = vmul.f32 %v356_v26, %v135_v18  ;;  %vm157_vm5 = vweird.f32 %v356_v26  ;;  %v358_v61 = vpop.eup %357  ;;  %v126_v18 = vmul.f32 0.5, %v556_v8 }
  0xb1   :  { %vm158_vm7 = vmor %vm156_vm6, %vm157_vm5 }
  0xb2   :  { %v144_v29 = vsel %vm143_vm3, %v354_v19, %v140_v27  ;;  %v153_v30 = vsub.f32 1.0, %v152_v28  ;;  %v360_v1 = vpop.eup %359  ;;  %vm305_vm3 = vcmask 523264  }
  0xb3   :  { %v149_v31 = vsel %vm146_vm4, %v148_v25, %v144_v29  ;;  %v362_v15 = vpop.eup %361 }
  0xb4   :  { %v166_v33 = vmul.f32 1.0614054, %v149_v31  ;;  %v154_v34 = vmul.f32 %v356_v26, %v153_v30  ;;  %v213_v22 = vmul.f32 32.0, %v362_v15  ;;  %vm217_vm11 = vweird.f32 %v362_v15 }
  0xb6   :  { %v168_v37 = vadd.f32 -1.4531521, %v166_v33  ;;  %v155_v38 = vadd.f32 %v356_v26, %v154_v34  ;;  %v214_v9 = vsub.f32 1.0, %v213_v22  ;;  %v270_v34 = vld [vmem:[#allocation9 + $0x18] sm:$0xff] }
  0xb7   :  { %337 = vmatpush.msra.mxu3 %v270_v34  ;;  %294 = vmatpush.msra.mxu1 %v270_v34 }
  0xb8   :  { %v170_v40 = vmul.f32 %v168_v37, %v149_v31  ;;  %v159_v41 = vsel %vm158_vm7, %v356_v26, %v155_v38  ;;  %v215_v23 = vmul.f32 %v362_v15, %v214_v9  ;;  %v268_v38 = vld [vmem:[#allocation9 + $0x8] sm:$0xff] }
  0xb9   :  { %v164_v44 = vsel %vm161_vm8, %v163_v39, %v159_v41  ;;  %338 = vmatpush.msra.mxu3 %v269_v36  ;;  %295 = vmatpush.msra.mxu1 %v269_v36 }
  0xba   :  { %v172_v45 = vadd.f32 1.4214138, %v170_v40  ;;  %v167_v46 = vmul.f32 1.0614054, %v164_v44  ;;  %v216_v13 = vadd.f32 %v362_v15, %v215_v23  ;;  %v267_v40 = vld [vmem:[#allocation9] sm:$0xff] }
  0xbb   :  { %339 = vmatpush.msra.mxu3 %v268_v38  ;;  %296 = vmatpush.msra.mxu1 %v268_v38 }
  0xbc   :  { %v174_v47 = vmul.f32 %v172_v45, %v149_v31  ;;  %v169_v48 = vadd.f32 -1.4531521, %v167_v46  ;;  %v218_v24 = vsel %vm217_vm11, %v362_v15, %v216_v13 }
  0xbd   :  { %340 = vmatpush.msra.mxu3 %v267_v40  ;;  %297 = vmatpush.msra.mxu1 %v267_v40 }
  0xbe   :  { %v176_v51 = vadd.f32 -0.28449672, %v174_v47  ;;  %v171_v52 = vmul.f32 %v169_v48, %v164_v44 }
  0xc0   :  { %v178_v53 = vmul.f32 %v176_v51, %v149_v31  ;;  %v173_v54 = vadd.f32 1.4214138, %v171_v52  ;;  %v350_v52 = vld [vmem:[#allocation8 + $0x1] ss:$0 sm:$0xff] }
  0xc2   :  { %v180_v56 = vadd.f32 0.2548296, %v178_v53  ;;  %v175_v57 = vmul.f32 %v173_v54, %v164_v44 }
  0xc4   :  { %v177_v58 = vadd.f32 -0.28449672, %v175_v57  ;;  %v182_v59 = vmul.f32 %v180_v56, %v149_v31 }
  0xc6   :  { %v179_v60 = vmul.f32 %v177_v58, %v164_v44  ;;  %v192_v63 = vmul.f32 %v358_v61, %v182_v59 }
  0xc8   :  { %v181_v62 = vadd.f32 0.2548296, %v179_v60  ;;  %v194_v3 = vsub.f32 1.0, %v192_v63 }
  0xca   :  { %v183_v0 = vmul.f32 %v181_v62, %v164_v44  ;;  %v198_v6 = vsub.f32 0.0, %v194_v3 }
  0xcc   :  { %v193_v2 = vmul.f32 %v360_v1, %v183_v0  ;;  %v200_v12 = vsel %vm196_vm10, %v194_v3, %v198_v6 }
  0xcd   :  { %v202_v17 = vadd.f32 1.0, %v200_v12 }
  0xce   :  { %v195_v4 = vsub.f32 1.0, %v193_v2 }
  0xcf   :  { %v204_v19 = vmul.f32 %v202_v17, %v126_v18 }
  0xd0   :  { %v199_v5 = vsub.f32 0.0, %v195_v4 }
  0xd1   :  { %v206_v20 = vsel %vm96_vm0, %v204_v19, 0.0 }
  0xd2   :  { %v201_v7 = vsel %vm197_vm9, %v195_v4, %v199_v5  ;;  %v352_v4 = vld [vmem:[%s593_s4] ss:$0 sm:$0xff] }
  0xd3   :  { %v203_v11 = vadd.f32 1.0, %v201_v7 }
  0xd5   :  { %v205_v14 = vmul.f32 %v203_v11, %v127_v10 }
  0xd7   :  { %v209_v16 = vsel %vm96_vm0, %v205_v14, 0.0 }
  0xd8   :  { %210 = vadd.xlane.f32.xlu0 %v209_v16 }
  0xe0   :  { %207 = vadd.xlane.f32.xlu0 %v206_v20 }
 0x14b   :  { %v211_v25 = vpop.xlane.xlu0 %210 }
 0x14c   :  { %v220_v26 = vmul.f32 %v218_v24, %v211_v25 }
 0x14e   :  { %v222_v27 = vsub.f32 %v205_v14, %v220_v26 }
 0x150   :  { %v224_v28 = vmul.f32 %v222_v27, %v222_v27 }
 0x152   :  { %v228_v29 = vsel %vm96_vm0, %v224_v28, 0.0 }
 0x153   :  { %229 = vadd.xlane.f32.xlu1 %v228_v29  ;;  %v208_v8 = vpop.xlane.xlu0 %207 }
 0x154   :  { %v219_v30 = vmul.f32 %v218_v24, %v208_v8 }
 0x156   :  { %v221_v31 = vsub.f32 %v204_v19, %v219_v30 }
 0x158   :  { %v223_v32 = vmul.f32 %v221_v31, %v221_v31 }
 0x15a   :  { %v225_v33 = vsel %vm96_vm0, %v223_v32, 0.0 }
 0x15b   :  { %226 = vadd.xlane.f32.xlu1 %v225_v33 }
 0x1c6   :  { %v230_v35 = vpop.xlane.xlu1 %229 }
 0x1c7   :  { %v232_v37 = vmul.f32 %v230_v35, %v218_v24 }
 0x1c9   :  { %v234_v39 = vadd.f32 1e-05, %v232_v37 }
 0x1cb   :  { %363 = vrsqrt.f32 %v234_v39  ;;  %vm251_vm13 = vweird.f32 %v234_v39 }
 0x1ce   :  { %v227_v41 = vpop.xlane.xlu1 %226 }
 0x1cf   :  { %v231_v42 = vmul.f32 %v227_v41, %v218_v24 }
 0x1d1   :  { %v364_v43 = vpop.eup %363  ;;  %v233_v44 = vadd.f32 1e-05, %v231_v42 }
 0x1d2   :  { %v246_v45 = vmul.f32 %v364_v43, %v234_v39  ;;  %vm252_vm12 = vweird.f32 %v364_v43 }
 0x1d3   :  { %365 = vrsqrt.f32 %v233_v44  ;;  %vm253_vm14 = vmor %vm251_vm13, %vm252_vm12  ;;  %vm241_vm1 = vweird.f32 %v233_v44 }
 0x1d4   :  { %v247_v46 = vmul.f32 %v364_v43, %v246_v45 }
 0x1d6   :  { %v248_v47 = vmul.f32 0.5, %v247_v46 }
 0x1d8   :  { %v249_v48 = vsub.f32 1.5, %v248_v47 }
 0x1d9   :  { %v366_v49 = vpop.eup %365 }
 0x1da   :  { %v250_v50 = vmul.f32 %v364_v43, %v249_v48  ;;  %v236_v51 = vmul.f32 %v366_v49, %v233_v44  ;;  %vm242_vm15 = vweird.f32 %v366_v49 }
 0x1db   :  { %vm243_vm2 = vmor %vm241_vm1, %vm242_vm15 }
 0x1dc   :  { %v254_v53 = vsel %vm253_vm14, %v364_v43, %v250_v50  ;;  %v237_v54 = vmul.f32 %v366_v49, %v236_v51 }
 0x1dd   :  { %v256_v56 = vmul.f32 %v254_v53, %v222_v27 }
 0x1de   :  { %v238_v57 = vmul.f32 0.5, %v237_v54 }
 0x1df   :  { %v259_v58 = vmul.f32 %v350_v52, %v256_v56 }
 0x1e0   :  { %v239_v59 = vsub.f32 1.5, %v238_v57 }
 0x1e1   :  { %v262_v60 = vadd.f32 %v351_v55, %v259_v58 }
 0x1e2   :  { %v240_v61 = vmul.f32 %v366_v49, %v239_v59 }
 0x1e3   :  { %264 = vst.msk [vmem:[#allocation2 + $0x8] sm:$0xff] %vm96_vm0, %v262_v60 }
 0x1e4   :  { %v244_v62 = vsel %vm243_vm2, %v366_v49, %v240_v61 }
 0x1e5   :  { %v255_v63 = vmul.f32 %v244_v62, %v221_v31 }
 0x1e7   :  { %v258_v0 = vmul.f32 %v350_v52, %v255_v63 }
 0x1e9   :  { %v261_v1 = vadd.f32 %v351_v55, %v258_v0 }
 0x1ea   :  { %v266_v2 = vld [vmem:[#allocation2 + $0x8] sm:$0xff] }
 0x1eb   :  { %263 = vst.msk [vmem:[#allocation2] sm:$0xff] %vm96_vm0, %v261_v1  ;;  %332 = vmatmul.msk.f32.vlgmr.msra.gmra.mxu3 %vm96_vm0, %v266_v2 }
 0x1f2   :  { %v265_v3 = vld [vmem:[#allocation2] sm:$0xff] }
 0x1f3   :  { %331 = vmatmul.msk.f32.vlgmr.msra.gmra.mxu1 %vm96_vm0, %v265_v3 }
 0x26e   :  { %v302_v5 = vpop.f32.mrf.mxu3 }
 0x26f   :  { %v303_v6 = vadd.f32 %v352_v4, %v302_v5 }
 0x270   :  { %v299_v7 = vpop.f32.mrf.mxu1 }
 0x271   :  { %307 = vst.msk [vmem:[#allocation11 + $0x8] sm:$0xff] %vm305_vm3, %v303_v6  ;;  %v300_v10 = vadd.f32 %v352_v4, %v299_v7 }
 0x273   :  { %306 = vst.msk [vmem:[#allocation11] sm:$0xff] %vm305_vm3, %v300_v10 }
 0x274   :  { %320 = dma.vmem_to_hbm [thread:$0]  %s313_s14, 256, %s315_s17, [#allocation5], %s496_s26, %s496_s26, %s497_s27  }
 0x275   :  { %493 = dma.done.wait [#allocation5], 256  }
 0x276   :  { %494 = vsyncadd [#allocation5], 4294967040 }
 0x277   :  { %325 = vsyncpa [#allocation4], 1 }
 0x278   :  { %326 = vsyncpa [#allocation7], 1 }
 0x279   :  { %327 = vsyncpa [#allocation10], 1 }
 0x27a   :  { %328 = vsyncpa [#allocation5], 1 }

</bundles_post_ra>
